<compile_context>
chip_gen: v5e
topology: v5e:2x2
jax: 0.10.0
libtpu: 0.0.40
codegen_flags: <defaults>
</compile_context>

<pallas_src>
import jax
import jax.numpy as jnp
from jax.experimental import pallas as pl
from jax.experimental.pallas import tpu as pltpu


def conv1x1_nchw_kernel(w_ref, b_ref, x_ref, o_ref):
    """One grid step = one image: (E, C) @ (C, HW) + bias -> (E, HW).

    w_ref: (E, C)  bf16  1x1-conv weight (resident across the whole grid)
    b_ref: (E, 1)  f32   bias, broadcast over the HW columns
    x_ref: (C, HW) bf16  this image's backbone features (NCHW view, batch squeezed)
    o_ref: (E, HW) f32   this image's output slice of (B, E, HW)
    """
    acc = jnp.dot(w_ref[...], x_ref[...], preferred_element_type=jnp.float32)
    o_ref[...] = (acc + b_ref[...]).astype(o_ref.dtype)


def encoder_cnn_head(raw_conv_feats, conv_weight, conv_bias,
                     *, compute_dtype=jnp.bfloat16):
    """Pallas implementation of EncoderCNN.linear (1x1 conv + Dropout2d-as-identity)
    followed by the final `.view(B, E, -1)`.

    raw_conv_feats: (B, 2048, h, w)   output of the truncated ResNet-101 trunk (NCHW)
    conv_weight:    (embed_size, 2048) 1x1 conv kernel with the 1x1 spatial dims squeezed
    conv_bias:      (embed_size,)
    returns:        (B, embed_size, h*w) float32
    """
    B, C, H, W = raw_conv_feats.shape
    E = conv_weight.shape[0]
    HW = H * W

    # Free reshape (NCHW is contiguous in (B, C, H*W)); bf16 halves DMA bytes,
    # accumulation stays f32 inside the kernel.
    x = raw_conv_feats.reshape(B, C, HW).astype(compute_dtype)
    w = conv_weight.astype(compute_dtype)              # (E, C)
    b = conv_bias.astype(jnp.float32).reshape(E, 1)    # added after f32 accumulation

    out = pl.pallas_call(
        conv1x1_nchw_kernel,
        out_shape=jax.ShapeDtypeStruct((B, E, HW), jnp.float32),
        grid_spec=pltpu.PrefetchScalarGridSpec(
            num_scalar_prefetch=0,
            grid=(B,),
            in_specs=[
                # Weight & bias: constant block index -> DMA'd once, kept resident.
                pl.BlockSpec((E, C), lambda bi: (0, 0)),
                pl.BlockSpec((E, 1), lambda bi: (0, 0)),
                # Per-image activations; batch dim squeezed out of the kernel Ref.
                pl.BlockSpec((None, C, HW), lambda bi: (bi, 0, 0)),
            ],
            out_specs=pl.BlockSpec((None, E, HW), lambda bi: (bi, 0, 0)),
        ),
        compiler_params=pltpu.CompilerParams(
            # Batch axis is independent -> megacore-shardable on v7x.
            dimension_semantics=("parallel",),
        ),
    )(w, b, x)
    return out


if __name__ == "__main__":
    key = jax.random.PRNGKey(0)
    k_x, k_w, k_b = jax.random.split(key, 3)

    # Small shapes consistent with the module: the ResNet-101 trunk always emits
    # 2048 channels; embed_size is free -> 32; tiny spatial map 4x4; batch 2.
    B, C_IN, H, W = 2, 2048, 4, 4
    EMBED = 32

    raw_conv_feats = jax.random.normal(k_x, (B, C_IN, H, W), dtype=jnp.float32)
    # Deterministic synthetic init for Conv2d(2048, EMBED, 1): fan-in scaled normal.
    conv_weight = jax.random.normal(k_w, (EMBED, C_IN), dtype=jnp.float32) * (1.0 / C_IN) ** 0.5
    conv_bias = jax.random.normal(k_b, (EMBED,), dtype=jnp.float32) * 0.01

    features = encoder_cnn_head(raw_conv_feats, conv_weight, conv_bias)
    features = jax.block_until_ready(features)

    # Reference in plain JAX, using the same bf16-rounded inputs the kernel consumes
    # (f32 accumulation on both sides), so tolerances stay tight.
    x32 = raw_conv_feats.astype(jnp.bfloat16).astype(jnp.float32)
    w32 = conv_weight.astype(jnp.bfloat16).astype(jnp.float32)
    ref = jnp.einsum("bchw,ec->behw", x32, w32,
                     precision=jax.lax.Precision.HIGHEST)
    ref = ref + conv_bias[None, :, None, None]
    ref = ref.reshape(B, EMBED, H * W)

    assert features.shape == (B, EMBED, H * W)
    assert features.dtype == jnp.float32
    assert jnp.allclose(features, ref, atol=1e-3, rtol=1e-3)

    print("KERNEL_OK")
</pallas_src>

<mosaic_0001>
module attributes {stable_mosaic.version = 11 : i64} {
  func.func @conv1x1_nchw_kernel(%arg0: i32, %arg1: memref<32x2048xbf16, #tpu.memory_space<vmem>>, %arg2: memref<32x1xf32, #tpu.memory_space<vmem>>, %arg3: memref<1x2048x16xbf16, #tpu.memory_space<vmem>>, %arg4: memref<1x32x16xf32, #tpu.memory_space<vmem>>) attributes {dimension_semantics = [#tpu.dimension_semantics<parallel>], iteration_bounds = array<i64: 2>, scalar_prefetch = 0 : i64, scratch_operands = 0 : i64, tpu.core_type = #tpu.core_type<tc>, window_params = [{pipeline_mode = #tpu.pipeline_mode<synchronous>, transform_indices = @transform_0, window_bounds = array<i64: 32, 2048>}, {pipeline_mode = #tpu.pipeline_mode<synchronous>, transform_indices = @transform_1, window_bounds = array<i64: 32, 1>}, {transform_indices = @transform_2, window_bounds = array<i64: 1, 2048, 16>}, {transform_indices = @transform_3, window_bounds = array<i64: 1, 32, 16>}]} {
    %c0 = arith.constant 0 : index
    %c0_0 = arith.constant 0 : index
    %0 = vector.load %arg1[%c0, %c0_0] : memref<32x2048xbf16, #tpu.memory_space<vmem>>, vector<32x2048xbf16>
    %c0_1 = arith.constant 0 : index
    %c0_2 = arith.constant 0 : index
    %c0_3 = arith.constant 0 : index
    %1 = vector.load %arg3[%c0_1, %c0_2, %c0_3] : memref<1x2048x16xbf16, #tpu.memory_space<vmem>>, vector<1x2048x16xbf16>
    %2 = vector.shape_cast %1 : vector<1x2048x16xbf16> to vector<2048x16xbf16>
    %cst = arith.constant dense<0.000000e+00> : vector<32x16xf32>
    %3 = tpu.matmul %0, %2, %cst {dimension_numbers = #tpu.dot_dimension_numbers<[1], [0], [0], [1], [0, 0, 1, 1], [], []>} : vector<32x2048xbf16>, vector<2048x16xbf16>, vector<32x16xf32> -> vector<32x16xf32>
    %c0_4 = arith.constant 0 : index
    %c0_5 = arith.constant 0 : index
    %4 = vector.load %arg2[%c0_4, %c0_5] : memref<32x1xf32, #tpu.memory_space<vmem>>, vector<32x1xf32>
    %5 = vector.broadcast %4 : vector<32x1xf32> to vector<32x16xf32>
    %6 = arith.addf %3, %5 : vector<32x16xf32>
    %c0_6 = arith.constant 0 : index
    %c0_7 = arith.constant 0 : index
    %c0_8 = arith.constant 0 : index
    %7 = vector.load %arg4[%c0_6, %c0_7, %c0_8] : memref<1x32x16xf32, #tpu.memory_space<vmem>>, vector<1x32x16xf32>
    %8 = vector.shape_cast %7 : vector<1x32x16xf32> to vector<32x16xf32>
    %9 = vector.shape_cast %6 : vector<32x16xf32> to vector<1x32x16xf32>
    tpu.vector_store %arg4[%c0_6, %c0_7, %c0_8], %9 {strides = array<i32>} : memref<1x32x16xf32, #tpu.memory_space<vmem>>, vector<1x32x16xf32>,
    return
  }
  func.func @transform_0(%arg0: i32) -> (i32, i32) {
    %c0_i32 = arith.constant 0 : i32
    %c0_i32_0 = arith.constant 0 : i32
    %c0_i32_1 = arith.constant 0 : i32
    return %c0_i32, %c0_i32_0 : i32, i32
  }
  func.func @transform_1(%arg0: i32) -> (i32, i32) {
    %c0_i32 = arith.constant 0 : i32
    %c0_i32_0 = arith.constant 0 : i32
    %c0_i32_1 = arith.constant 0 : i32
    return %c0_i32, %c0_i32_0 : i32, i32
  }
  func.func @transform_2(%arg0: i32) -> (i32, i32, i32) {
    %c0_i32 = arith.constant 0 : i32
    %c0_i32_0 = arith.constant 0 : i32
    %c0_i32_1 = arith.constant 0 : i32
    return %arg0, %c0_i32, %c0_i32_0 : i32, i32, i32
  }
  func.func @transform_3(%arg0: i32) -> (i32, i32, i32) {
    %c0_i32 = arith.constant 0 : i32
    %c0_i32_0 = arith.constant 0 : i32
    %c0_i32_1 = arith.constant 0 : i32
    return %arg0, %c0_i32, %c0_i32_0 : i32, i32, i32
  }
}

</mosaic_0001>

<bundles_post_ra>
// kernel: tpu_custom_call.1
= control target key start
LH: loop header
LB: loop body
LE: loop exit
PB: predicated region body
PF: predicated region fallthrough
CT: control target
= control target key end

     0   :  { %s2628_s12 = smov 0   ;;  %s2993_s0 = inlined_call_operand.vmem [shape: bf16[32,2048], index: 0, kind: input, shape index: {}]   ;;  %s2994_s1 = inlined_call_operand.vmem [shape: f32[32,1], index: 1, kind: input, shape index: {}]   ;;  %s2995_s2 = inlined_call_operand.vmem [shape: bf16[2,2048,16], index: 2, kind: input, shape index: {}]   ;;  %s2996_s3 = inlined_call_operand.vmem [shape: f32[2,32,16], index: 3, kind: output, shape index: {}]  }
   0x1 LB: > { %s1775_s13 = sadd.s32 4294967295, %s2605_s12   ;;  %p1779_p0 = scmp.ge.s32.totalorder %s2605_s12, 1  ;;  %s2605_s12 = sphi %s2628_s12, %s13_s12  }
   0x2   : > { %p137_p1 = scmp.lt.s32.totalorder %s2605_s12, 3 }
   0x4   : > { %p138_p2 = pnand %p1779_p0, %p137_p1 }
   0x5   : > { %p161_p3 = scmp.lt.s32.totalorder (!%p138_p2), %s1775_s13, 1 }
   0x6   : > { %141 = sbr.rel (%p138_p2) target bundleno = 305 (0x131), region = 32 }
   0xb   : > { %s2998_s13 = smov (!%p161_p3, %s1775_s13), 1  ;;  %v2607_v16 = vmov 0   ;;  %v459_v21 = vld [vmem:[%s2994_s1] sm:$0xff]  ;;  %v460_v28 = vld [vmem:[%s2994_s1 + $0x8] sm:$0xff]  ;;  %v461_v43 = vld [vmem:[%s2994_s1 + $0x10] sm:$0xff]  ;;  %vm1715_vm0 = vcmask 130048  }
   0xc   : > { %s2426_s14 = sshll.u32 %s2998_s13, 10  ;;  %2597 = vset.pattern.permute.xlu0 %v2607_v16  ;;  %2598 = vset.pattern.permute.xlu1 %v2607_v16  ;;  %v1786_v32 = vld [vmem:[%s2993_s0] sm:$0xf]  ;;  %v2428_v34 = vld [vmem:[%s2993_s0 + $0x4] sm:$0xf]  ;;  %v462_v56 = vld [vmem:[%s2994_s1 + $0x18] sm:$0xff] }
   0xd   : > { %s2642_s17 = scalar_lea.vmem %s2995_s2, %s2426_s14  ;;  %465 = vperm.xlu0 %2597, %v459_v21   ;;  %v2436_v33 = vld [vmem:[%s2993_s0 + $0x3c] sm:$0xf0]  ;;  %v1788_v38 = vld [vmem:[%s2993_s0 + $0x40] sm:$0xf0]  ;;  %v1794_v39 = vld [vmem:[%s2993_s0 + $0x8] sm:$0xf]  ;;  %475 = vperm.xlu1 %2598, %v461_v43  }
   0xe   : > { %v2467_v0 = vld [vmem:[%s2642_s17 + $0x38] sm:$0xff]  ;;  %v2466_v4 = vld [vmem:[%s2642_s17 + $0x30] sm:$0xff]  ;;  %v2465_v8 = vld [vmem:[%s2642_s17 + $0x28] sm:$0xff]  ;;  %v1787_v46 = vor.u32 %v2436_v33, %v1786_v32  ;;  %v1791_v47 = vor.u32 %v2428_v34, %v1788_v38  ;;  %s2427_s6 = sshll.u32 %s2998_s13, 5 }
   0xf   : > { %v2475_v1 = vld [vmem:[%s2642_s17 + $0x78] sm:$0xff]  ;;  %1411 = vmatpush.bf16.msra.mxu0 %v2467_v0  ;;  %v2474_v5 = vld [vmem:[%s2642_s17 + $0x70] sm:$0xff]  ;;  %v2473_v9 = vld [vmem:[%s2642_s17 + $0x68] sm:$0xff]  ;;  %s2980_s8 = scalar_lea.vmem %s2996_s3, %s2427_s6 }
  0x10   : > { %v2483_v2 = vld [vmem:[%s2642_s17 + $0xb8] sm:$0xff]  ;;  %1430 = vmatpush.bf16.msra.mxu1 %v2475_v1  ;;  %v2482_v6 = vld [vmem:[%s2642_s17 + $0xb0] sm:$0xff]  ;;  %v2481_v10 = vld [vmem:[%s2642_s17 + $0xa8] sm:$0xff] }
  0x11   : > { %v2491_v3 = vld [vmem:[%s2642_s17 + $0xf8] sm:$0xff]  ;;  %1449 = vmatpush.bf16.msra.mxu2 %v2483_v2  ;;  %v2490_v7 = vld [vmem:[%s2642_s17 + $0xf0] sm:$0xff]  ;;  %v2489_v11 = vld [vmem:[%s2642_s17 + $0xe8] sm:$0xff] }
  0x12   : > { %1468 = vmatpush.bf16.msra.mxu3 %v2491_v3  ;;  %v2464_v12 = vld [vmem:[%s2642_s17 + $0x20] sm:$0xff]  ;;  %v2463_v17 = vld [vmem:[%s2642_s17 + $0x18] sm:$0xff]  ;;  %v2462_v22 = vld [vmem:[%s2642_s17 + $0x10] sm:$0xff] }
  0x13   : > { %1412 = vmatpush.bf16.msra.mxu0 %v2466_v4  ;;  %v2472_v13 = vld [vmem:[%s2642_s17 + $0x60] sm:$0xff]  ;;  %v2471_v18 = vld [vmem:[%s2642_s17 + $0x58] sm:$0xff]  ;;  %v2470_v23 = vld [vmem:[%s2642_s17 + $0x50] sm:$0xff] }
  0x14   : > { %1431 = vmatpush.bf16.msra.mxu1 %v2474_v5  ;;  %v2480_v14 = vld [vmem:[%s2642_s17 + $0xa0] sm:$0xff]  ;;  %v2479_v19 = vld [vmem:[%s2642_s17 + $0x98] sm:$0xff]  ;;  %v2478_v24 = vld [vmem:[%s2642_s17 + $0x90] sm:$0xff] }
  0x15   : > { %1450 = vmatpush.bf16.msra.mxu2 %v2482_v6  ;;  %v2488_v15 = vld [vmem:[%s2642_s17 + $0xe0] sm:$0xff]  ;;  %v2487_v20 = vld [vmem:[%s2642_s17 + $0xd8] sm:$0xff]  ;;  %v2486_v25 = vld [vmem:[%s2642_s17 + $0xd0] sm:$0xff]  ;;  %470 = vperm.xlu0 %2597, %v460_v28  }
  0x16   : > { %1469 = vmatpush.bf16.msra.mxu3 %v2490_v7  ;;  %v2461_v26 = vld [vmem:[%s2642_s17 + $0x8] sm:$0xff]  ;;  %v2460_v31 = vld [vmem:[%s2642_s17] sm:$0xff]  ;;  %v2515_v44 = vld [vmem:[%s2642_s17 + $0x1b8] sm:$0xff]  ;;  %480 = vperm.xlu1 %2598, %v462_v56  }
  0x17   : > { %1413 = vmatpush.bf16.msra.mxu0 %v2465_v8  ;;  %v2469_v27 = vld [vmem:[%s2642_s17 + $0x48] sm:$0xff]  ;;  %v2468_v35 = vld [vmem:[%s2642_s17 + $0x40] sm:$0xff]  ;;  %v2499_v45 = vld [vmem:[%s2642_s17 + $0x138] sm:$0xff] }
  0x18   : > { %1432 = vmatpush.bf16.msra.mxu1 %v2473_v9  ;;  %v2477_v29 = vld [vmem:[%s2642_s17 + $0x88] sm:$0xff]  ;;  %v2476_v36 = vld [vmem:[%s2642_s17 + $0x80] sm:$0xff]  ;;  %v2507_v50 = vld [vmem:[%s2642_s17 + $0x178] sm:$0xff] }
  0x19   : > { %1451 = vmatpush.bf16.msra.mxu2 %v2481_v10  ;;  %v2485_v30 = vld [vmem:[%s2642_s17 + $0xc8] sm:$0xff]  ;;  %v2484_v37 = vld [vmem:[%s2642_s17 + $0xc0] sm:$0xff]  ;;  %v2523_v51 = vld [vmem:[%s2642_s17 + $0x1f8] sm:$0xff] }
  0x1a   : > { %1470 = vmatpush.bf16.msra.mxu3 %v2489_v11  ;;  %v2437_v40 = vld [vmem:[%s2993_s0 + $0x44] sm:$0xf0]  ;;  %v2429_v41 = vld [vmem:[%s2993_s0 + $0xc] sm:$0xf]  ;;  %v2514_v52 = vld [vmem:[%s2642_s17 + $0x1b0] sm:$0xff] }
  0x1b   : > { %1414 = vmatpush.bf16.msra.mxu0 %v2464_v12  ;;  %v1796_v42 = vld [vmem:[%s2993_s0 + $0x48] sm:$0xf0]  ;;  %v1795_v48 = vor.u32 %v2437_v40, %v1794_v39  ;;  %v2498_v53 = vld [vmem:[%s2642_s17 + $0x130] sm:$0xff]  ;;  %v2512_v61 = vld [vmem:[%s2642_s17 + $0x1a0] sm:$0xff] }
  0x1c   : > { %1433 = vmatpush.bf16.msra.mxu1 %v2472_v13  ;;  %v1799_v49 = vor.u32 %v2429_v41, %v1796_v42  ;;  %v2506_v54 = vld [vmem:[%s2642_s17 + $0x170] sm:$0xff]  ;;  %v2513_v57 = vld [vmem:[%s2642_s17 + $0x1a8] sm:$0xff]  ;;  %v2496_v62 = vld [vmem:[%s2642_s17 + $0x120] sm:$0xff] }
  0x1d   : > { %1452 = vmatpush.bf16.msra.mxu2 %v2480_v14  ;;  %v2522_v55 = vld [vmem:[%s2642_s17 + $0x1f0] sm:$0xff]  ;;  %v2497_v58 = vld [vmem:[%s2642_s17 + $0x128] sm:$0xff]  ;;  %v2504_v63 = vld [vmem:[%s2642_s17 + $0x160] sm:$0xff] }
  0x1e   : > { %1471 = vmatpush.bf16.msra.mxu3 %v2488_v15  ;;  %v2505_v59 = vld [vmem:[%s2642_s17 + $0x168] sm:$0xff]  ;;  %v2520_v0 = vld [vmem:[%s2642_s17 + $0x1e0] sm:$0xff]  ;;  %v2511_v9 = vld [vmem:[%s2642_s17 + $0x198] sm:$0xff] }
  0x1f   : > { %1415 = vmatpush.bf16.msra.mxu0 %v2463_v17  ;;  %v2521_v60 = vld [vmem:[%s2642_s17 + $0x1e8] sm:$0xff]  ;;  %v1850_v1 = vld [vmem:[%s2993_s0 + $0x80] sm:$0xf]  ;;  %v2444_v3 = vld [vmem:[%s2993_s0 + $0x84] sm:$0xf] }
  0x20   : > { %1434 = vmatpush.bf16.msra.mxu1 %v2471_v18  ;;  %v2452_v2 = vld [vmem:[%s2993_s0 + $0xbc] sm:$0xf0]  ;;  %v1852_v4 = vld [vmem:[%s2993_s0 + $0xc0] sm:$0xf0]  ;;  %v1858_v5 = vld [vmem:[%s2993_s0 + $0x88] sm:$0xf] }
  0x21   : > { %1453 = vmatpush.bf16.msra.mxu2 %v2479_v19  ;;  %v2453_v6 = vld [vmem:[%s2993_s0 + $0xc4] sm:$0xf0]  ;;  %v2445_v7 = vld [vmem:[%s2993_s0 + $0x8c] sm:$0xf]  ;;  %v2495_v10 = vld [vmem:[%s2642_s17 + $0x118] sm:$0xff]  ;;  %v1851_v11 = vor.u32 %v2452_v2, %v1850_v1  ;;  %v1855_v12 = vor.u32 %v2444_v3, %v1852_v4 }
  0x22   : > { %1472 = vmatpush.bf16.msra.mxu3 %v2487_v20  ;;  %v1860_v8 = vld [vmem:[%s2993_s0 + $0xc8] sm:$0xf0]  ;;  %v1859_v13 = vor.u32 %v2453_v6, %v1858_v5  ;;  %v2503_v15 = vld [vmem:[%s2642_s17 + $0x158] sm:$0xff]  ;;  %v2510_v17 = vld [vmem:[%s2642_s17 + $0x190] sm:$0xff] }
  0x23   : > { %1416 = vmatpush.bf16.msra.mxu0 %v2462_v22  ;;  %v1863_v14 = vor.u32 %v2445_v7, %v1860_v8  ;;  %v2519_v16 = vld [vmem:[%s2642_s17 + $0x1d8] sm:$0xff]  ;;  %v2494_v18 = vld [vmem:[%s2642_s17 + $0x110] sm:$0xff]  ;;  %v2509_v21 = vld [vmem:[%s2642_s17 + $0x188] sm:$0xff] }
  0x24   : > { %1435 = vmatpush.bf16.msra.mxu1 %v2470_v23  ;;  %v2502_v19 = vld [vmem:[%s2642_s17 + $0x150] sm:$0xff]  ;;  %v2493_v22 = vld [vmem:[%s2642_s17 + $0x108] sm:$0xff]  ;;  %v2516_v28 = vld [vmem:[%s2642_s17 + $0x1c0] sm:$0xff] }
  0x25   : > { %1454 = vmatpush.bf16.msra.mxu2 %v2478_v24  ;;  %v2518_v20 = vld [vmem:[%s2642_s17 + $0x1d0] sm:$0xff]  ;;  %v2501_v23 = vld [vmem:[%s2642_s17 + $0x148] sm:$0xff]  ;;  %v1812_v38 = vld [vmem:[%s2993_s0 + $0x58] sm:$0xf0] }
  0x26   : > { %1473 = vmatpush.bf16.msra.mxu3 %v2486_v25  ;;  %v2517_v24 = vld [vmem:[%s2642_s17 + $0x1c8] sm:$0xff]  ;;  %v2508_v25 = vld [vmem:[%s2642_s17 + $0x180] sm:$0xff]  ;;  %v2438_v32 = vld [vmem:[%s2993_s0 + $0x4c] sm:$0xf0] }
  0x27   : > { %1417 = vmatpush.bf16.msra.mxu0 %v2461_v26  ;;  %v2492_v26 = vld [vmem:[%s2642_s17 + $0x100] sm:$0xff]  ;;  %v2430_v33 = vld [vmem:[%s2993_s0 + $0x14] sm:$0xf]  ;;  %v2539_v39 = vld [vmem:[%s2642_s17 + $0x278] sm:$0xff] }
  0x28   : > { %1436 = vmatpush.bf16.msra.mxu1 %v2469_v27  ;;  %v2500_v27 = vld [vmem:[%s2642_s17 + $0x140] sm:$0xff]  ;;  %v1804_v34 = vld [vmem:[%s2993_s0 + $0x50] sm:$0xf0]  ;;  %v2555_v40 = vld [vmem:[%s2642_s17 + $0x2f8] sm:$0xff] }
  0x29   : > { %1455 = vmatpush.bf16.msra.mxu2 %v2477_v29  ;;  %v1802_v29 = vld [vmem:[%s2993_s0 + $0x10] sm:$0xf]  ;;  %v1807_v43 = vor.u32 %v2430_v33, %v1804_v34  ;;  %v2552_v56 = vld [vmem:[%s2642_s17 + $0x2e0] sm:$0xff]  ;;  %v2527_v1 = vld [vmem:[%s2642_s17 + $0x218] sm:$0xff] }
  0x2a   : > { %1474 = vmatpush.bf16.msra.mxu3 %v2485_v30  ;;  %v2547_v30 = vld [vmem:[%s2642_s17 + $0x2b8] sm:$0xff]  ;;  %v1803_v41 = vor.u32 %v2438_v32, %v1802_v29  ;;  %v2546_v42 = vld [vmem:[%s2642_s17 + $0x2b0] sm:$0xff]  ;;  %v1820_v29 = vld [vmem:[%s2993_s0 + $0x60] sm:$0xf0] }
  0x2b   : > { %1418 = vmatpush.bf16.msra.mxu0 %v2460_v31  ;;  %v2531_v31 = vld [vmem:[%s2642_s17 + $0x238] sm:$0xff]  ;;  %v2542_v6 = vld [vmem:[%s2642_s17 + $0x290] sm:$0xff]  ;;  %v2433_v32 = vld [vmem:[%s2993_s0 + $0x2c] sm:$0xf] }
  0x2c   : > { %1437 = vmatpush.bf16.msra.mxu1 %v2468_v35  ;;  %v1810_v35 = vld [vmem:[%s2993_s0 + $0x18] sm:$0xf]  ;;  %v1876_v2 = vld [vmem:[%s2993_s0 + $0xd8] sm:$0xf0]  ;;  %v1828_v33 = vld [vmem:[%s2993_s0 + $0x68] sm:$0xf0] }
  0x2d   : > { %1456 = vmatpush.bf16.msra.mxu2 %v2476_v36  ;;  %v2439_v36 = vld [vmem:[%s2993_s0 + $0x54] sm:$0xf0] }
  0x2e   : > { %1475 = vmatpush.bf16.msra.mxu3 %v2484_v37  ;;  %1419 = vmatmul.bf16.vlgmr.msra.gmra.mxu0 %v1787_v46  ;;  %v2431_v37 = vld [vmem:[%s2993_s0 + $0x1c] sm:$0xf]  ;;  %v2530_v46 = vld [vmem:[%s2642_s17 + $0x230] sm:$0xff] }
  0x2f   : > { %1487 = vmatpush.bf16.msrb.mxu0 %v2499_v45  ;;  %1438 = vmatmul.bf16.vlgmr.msra.gmra.mxu1 %v1791_v47  ;;  %v1815_v45 = vor.u32 %v2431_v37, %v1812_v38  ;;  %v2538_v47 = vld [vmem:[%s2642_s17 + $0x270] sm:$0xff]  ;;  %v2535_v3 = vld [vmem:[%s2642_s17 + $0x258] sm:$0xff]  ;;  %v1831_v38 = vor.u32 %v2433_v32, %v1828_v33 }
  0x30   : > { %1457 = vmatmul.bf16.vlgmr.msra.gmra.mxu2 %v1795_v48  ;;  %1506 = vmatpush.bf16.msrb.mxu1 %v2507_v50  ;;  %v2554_v48 = vld [vmem:[%s2642_s17 + $0x2f0] sm:$0xff]  ;;  %v2529_v50 = vld [vmem:[%s2642_s17 + $0x228] sm:$0xff]  ;;  %v2551_v4 = vld [vmem:[%s2642_s17 + $0x2d8] sm:$0xff] }
  0x31   : > { %1525 = vmatpush.bf16.msrb.mxu2 %v2515_v44  ;;  %1476 = vmatmul.bf16.vlgmr.msra.gmra.mxu3 %v1799_v49  ;;  %v1811_v44 = vor.u32 %v2439_v36, %v1810_v35  ;;  %v2545_v49 = vld [vmem:[%s2642_s17 + $0x2a8] sm:$0xff]  ;;  %v2570_v35 = vld [vmem:[%s2642_s17 + $0x370] sm:$0xff]  ;;  %v1908_v32 = vld [vmem:[%s2993_s0 + $0xf8] sm:$0xf0] }
  0x32   : > { %1544 = vmatpush.bf16.msrb.mxu3 %v2523_v51  ;;  %v2537_v51 = vld [vmem:[%s2642_s17 + $0x268] sm:$0xff] }
  0x33   : > { %1488 = vmatpush.bf16.msrb.mxu0 %v2498_v53  ;;  %v2544_v53 = vld [vmem:[%s2642_s17 + $0x2a0] sm:$0xff] }
  0x34   : > { %1507 = vmatpush.bf16.msrb.mxu1 %v2506_v54  ;;  %v2528_v54 = vld [vmem:[%s2642_s17 + $0x220] sm:$0xff] }
  0x35   : > { %1526 = vmatpush.bf16.msrb.mxu2 %v2514_v52  ;;  %v2553_v52 = vld [vmem:[%s2642_s17 + $0x2e8] sm:$0xff] }
  0x36   : > { %1545 = vmatpush.bf16.msrb.mxu3 %v2522_v55  ;;  %v2536_v55 = vld [vmem:[%s2642_s17 + $0x260] sm:$0xff] }
  0x37   : > { %1489 = vmatpush.bf16.msrb.mxu0 %v2497_v58  ;;  %v2454_v58 = vld [vmem:[%s2993_s0 + $0xcc] sm:$0xf0] }
  0x38   : > { %1508 = vmatpush.bf16.msrb.mxu1 %v2505_v59  ;;  %v2543_v59 = vld [vmem:[%s2642_s17 + $0x298] sm:$0xff] }
  0x39   : > { %1527 = vmatpush.bf16.msrb.mxu2 %v2513_v57  ;;  %v1866_v57 = vld [vmem:[%s2993_s0 + $0x90] sm:$0xf] }
  0x3a   : > { %1546 = vmatpush.bf16.msrb.mxu3 %v2521_v60  ;;  %v2446_v60 = vld [vmem:[%s2993_s0 + $0x94] sm:$0xf]  ;;  %v1867_v5 = vor.u32 %v2454_v58, %v1866_v57  ;;  %v2449_v57 = vld [vmem:[%s2993_s0 + $0xac] sm:$0xf]  ;;  %v2559_v58 = vld [vmem:[%s2642_s17 + $0x318] sm:$0xff] }
  0x3b   : > { %1490 = vmatpush.bf16.msrb.mxu0 %v2496_v62  ;;  %v1874_v62 = vld [vmem:[%s2993_s0 + $0x98] sm:$0xf] }
  0x3c   : > { %1509 = vmatpush.bf16.msrb.mxu1 %v2504_v63  ;;  %v2455_v63 = vld [vmem:[%s2993_s0 + $0xd4] sm:$0xf0] }
  0x3d   : > { %1528 = vmatpush.bf16.msrb.mxu2 %v2512_v61  ;;  %v1868_v61 = vld [vmem:[%s2993_s0 + $0xd0] sm:$0xf0]  ;;  %v1875_v8 = vor.u32 %v2455_v63, %v1874_v62 }
  0x3e   : > { %1547 = vmatpush.bf16.msrb.mxu3 %v2520_v0  ;;  %1424 = vmatmul.bf16.gmra.mxu0 %v1851_v11  ;;  %v2447_v0 = vld [vmem:[%s2993_s0 + $0x9c] sm:$0xf]  ;;  %v1871_v7 = vor.u32 %v2446_v60, %v1868_v61  ;;  %v2534_v11 = vld [vmem:[%s2642_s17 + $0x250] sm:$0xff] }
  0x3f   : > { %1491 = vmatpush.bf16.msrb.mxu0 %v2495_v10  ;;  %1443 = vmatmul.bf16.gmra.mxu1 %v1855_v12  ;;  %v2526_v10 = vld [vmem:[%s2642_s17 + $0x210] sm:$0xff]  ;;  %v2583_v60 = vld [vmem:[%s2642_s17 + $0x3d8] sm:$0xff] }
  0x40   : > { %1462 = vmatmul.bf16.gmra.mxu2 %v1859_v13  ;;  %1510 = vmatpush.bf16.msrb.mxu1 %v2503_v15  ;;  %v2550_v12 = vld [vmem:[%s2642_s17 + $0x2d0] sm:$0xff]  ;;  %v2541_v13 = vld [vmem:[%s2642_s17 + $0x288] sm:$0xff] }
  0x41   : > { %1529 = vmatpush.bf16.msrb.mxu2 %v2511_v9  ;;  %1481 = vmatmul.bf16.gmra.mxu3 %v1863_v14  ;;  %v1879_v9 = vor.u32 %v2447_v0, %v1876_v2  ;;  %v2525_v14 = vld [vmem:[%s2642_s17 + $0x208] sm:$0xff]  ;;  %v2574_v61 = vld [vmem:[%s2642_s17 + $0x390] sm:$0xff] }
  0x42   : > { %1548 = vmatpush.bf16.msrb.mxu3 %v2519_v16  ;;  %v2533_v15 = vld [vmem:[%s2642_s17 + $0x248] sm:$0xff]  ;;  %v2566_v63 = vld [vmem:[%s2642_s17 + $0x350] sm:$0xff] }
  0x43   : > { %1492 = vmatpush.bf16.msrb.mxu0 %v2494_v18  ;;  %v2549_v16 = vld [vmem:[%s2642_s17 + $0x2c8] sm:$0xff]  ;;  %v2579_v18 = vld [vmem:[%s2642_s17 + $0x3b8] sm:$0xff] }
  0x44   : > { %1511 = vmatpush.bf16.msrb.mxu1 %v2502_v19  ;;  %v2524_v19 = vld [vmem:[%s2642_s17 + $0x200] sm:$0xff] }
  0x45   : > { %1530 = vmatpush.bf16.msrb.mxu2 %v2510_v17  ;;  %v2540_v17 = vld [vmem:[%s2642_s17 + $0x280] sm:$0xff] }
  0x46   : > { %1549 = vmatpush.bf16.msrb.mxu3 %v2518_v20  ;;  %v2532_v20 = vld [vmem:[%s2642_s17 + $0x240] sm:$0xff] }
  0x47   : > { %1493 = vmatpush.bf16.msrb.mxu0 %v2493_v22  ;;  %v1818_v22 = vld [vmem:[%s2993_s0 + $0x20] sm:$0xf] }
  0x48   : > { %1512 = vmatpush.bf16.msrb.mxu1 %v2501_v23  ;;  %v2440_v23 = vld [vmem:[%s2993_s0 + $0x5c] sm:$0xf0] }
  0x49   : > { %1531 = vmatpush.bf16.msrb.mxu2 %v2509_v21  ;;  %v2548_v21 = vld [vmem:[%s2642_s17 + $0x2c0] sm:$0xff]  ;;  %v1819_v34 = vor.u32 %v2440_v23, %v1818_v22 }
  0x4a   : > { %1550 = vmatpush.bf16.msrb.mxu3 %v2517_v24  ;;  %v2563_v24 = vld [vmem:[%s2642_s17 + $0x338] sm:$0xff] }
  0x4b   : > { %1494 = vmatpush.bf16.msrb.mxu0 %v2492_v26  ;;  %v2432_v26 = vld [vmem:[%s2993_s0 + $0x24] sm:$0xf] }
  0x4c   : > { %1513 = vmatpush.bf16.msrb.mxu1 %v2500_v27  ;;  %v2587_v27 = vld [vmem:[%s2642_s17 + $0x3f8] sm:$0xff]  ;;  %v1823_v36 = vor.u32 %v2432_v26, %v1820_v29  ;;  %v2458_v26 = vld [vmem:[%s2993_s0 + $0xec] sm:$0xf0] }
  0x4d   : > { %1532 = vmatpush.bf16.msrb.mxu2 %v2508_v25  ;;  %v2571_v25 = vld [vmem:[%s2642_s17 + $0x378] sm:$0xff] }
  0x4e   : > { %1551 = vmatpush.bf16.msrb.mxu3 %v2516_v28  ;;  %1495 = vmatmul.bf16.vlgmr.msrb.gmra.mxu0 %v1803_v41  ;;  %v2578_v28 = vld [vmem:[%s2642_s17 + $0x3b0] sm:$0xff]  ;;  %v2577_v41 = vld [vmem:[%s2642_s17 + $0x3a8] sm:$0xff]  ;;  %v1906_v29 = vld [vmem:[%s2993_s0 + $0xb8] sm:$0xf] }
  0x4f   : > { %1563 = vmatpush.bf16.msra.mxu0 %v2531_v31  ;;  %1514 = vmatmul.bf16.vlgmr.msrb.gmra.mxu1 %v1807_v43  ;;  %v2441_v31 = vld [vmem:[%s2993_s0 + $0x64] sm:$0xf0] }
  0x50   : > { %1582 = vmatpush.bf16.msra.mxu1 %v2539_v39  ;;  %1533 = vmatmul.bf16.vlgmr.msrb.gmra.mxu2 %v1811_v44  ;;  %v2562_v39 = vld [vmem:[%s2642_s17 + $0x330] sm:$0xff]  ;;  %v2561_v43 = vld [vmem:[%s2642_s17 + $0x328] sm:$0xff] }
  0x51   : > { %1601 = vmatpush.bf16.msra.mxu2 %v2547_v30  ;;  %1552 = vmatmul.bf16.vlgmr.msrb.gmra.mxu3 %v1815_v45  ;;  %v1826_v30 = vld [vmem:[%s2993_s0 + $0x28] sm:$0xf]  ;;  %v2576_v45 = vld [vmem:[%s2642_s17 + $0x3a0] sm:$0xff] }
  0x52   : > { %1620 = vmatpush.bf16.msra.mxu3 %v2555_v40  ;;  %v1827_v37 = vor.u32 %v2441_v31, %v1826_v30  ;;  %v2586_v40 = vld [vmem:[%s2642_s17 + $0x3f0] sm:$0xff]  ;;  %v2585_v44 = vld [vmem:[%s2642_s17 + $0x3e8] sm:$0xff]  ;;  %v2459_v30 = vld [vmem:[%s2993_s0 + $0xf4] sm:$0xf0] }
  0x53   : > { %1564 = vmatpush.bf16.msra.mxu0 %v2530_v46  ;;  %v2568_v46 = vld [vmem:[%s2642_s17 + $0x360] sm:$0xff]  ;;  %v2451_v31 = vld [vmem:[%s2993_s0 + $0xbc] sm:$0xf] }
  0x54   : > { %1583 = vmatpush.bf16.msra.mxu1 %v2538_v47  ;;  %v2560_v47 = vld [vmem:[%s2642_s17 + $0x320] sm:$0xff] }
  0x55   : > { %1602 = vmatpush.bf16.msra.mxu2 %v2546_v42  ;;  %v2569_v42 = vld [vmem:[%s2642_s17 + $0x368] sm:$0xff] }
  0x56   : > { %1621 = vmatpush.bf16.msra.mxu3 %v2554_v48  ;;  %v2584_v48 = vld [vmem:[%s2642_s17 + $0x3e0] sm:$0xff] }
  0x57   : > { %1565 = vmatpush.bf16.msra.mxu0 %v2529_v50  ;;  %v1882_v50 = vld [vmem:[%s2993_s0 + $0xa0] sm:$0xf] }
  0x58   : > { %1584 = vmatpush.bf16.msra.mxu1 %v2537_v51  ;;  %v2456_v51 = vld [vmem:[%s2993_s0 + $0xdc] sm:$0xf0] }
  0x59   : > { %1603 = vmatpush.bf16.msra.mxu2 %v2545_v49  ;;  %v2575_v49 = vld [vmem:[%s2642_s17 + $0x398] sm:$0xff]  ;;  %v1883_v62 = vor.u32 %v2456_v51, %v1882_v50 }
  0x5a   : > { %1622 = vmatpush.bf16.msra.mxu3 %v2553_v52  ;;  %v2567_v52 = vld [vmem:[%s2642_s17 + $0x358] sm:$0xff] }
  0x5b   : > { %1566 = vmatpush.bf16.msra.mxu0 %v2528_v54  ;;  %v1884_v54 = vld [vmem:[%s2993_s0 + $0xe0] sm:$0xf0] }
  0x5c   : > { %1585 = vmatpush.bf16.msra.mxu1 %v2536_v55  ;;  %v1890_v55 = vld [vmem:[%s2993_s0 + $0xa8] sm:$0xf] }
  0x5d   : > { %1604 = vmatpush.bf16.msra.mxu2 %v2544_v53  ;;  %v2448_v53 = vld [vmem:[%s2993_s0 + $0xa4] sm:$0xf] }
  0x5e   : > { %1623 = vmatpush.bf16.msra.mxu3 %v2552_v56  ;;  %1500 = vmatmul.bf16.gmra.mxu0 %v1867_v5  ;;  %v2457_v56 = vld [vmem:[%s2993_s0 + $0xe4] sm:$0xf0]  ;;  %v1887_v0 = vor.u32 %v2448_v53, %v1884_v54 }
  0x5f   : > { %1567 = vmatpush.bf16.msra.mxu0 %v2527_v1  ;;  %1519 = vmatmul.bf16.gmra.mxu1 %v1871_v7  ;;  %v1891_v1 = vor.u32 %v2457_v56, %v1890_v55  ;;  %v2573_v5 = vld [vmem:[%s2642_s17 + $0x388] sm:$0xff] }
  0x60   : > { %1586 = vmatpush.bf16.msra.mxu1 %v2535_v3  ;;  %1538 = vmatmul.bf16.gmra.mxu2 %v1875_v8  ;;  %v2558_v3 = vld [vmem:[%s2642_s17 + $0x310] sm:$0xff]  ;;  %v2557_v7 = vld [vmem:[%s2642_s17 + $0x308] sm:$0xff] }
  0x61   : > { %1605 = vmatpush.bf16.msra.mxu2 %v2543_v59  ;;  %1557 = vmatmul.bf16.gmra.mxu3 %v1879_v9  ;;  %v1892_v59 = vld [vmem:[%s2993_s0 + $0xe8] sm:$0xf0]  ;;  %v2572_v9 = vld [vmem:[%s2642_s17 + $0x380] sm:$0xff] }
  0x62   : > { %1624 = vmatpush.bf16.msra.mxu3 %v2551_v4  ;;  %v1895_v2 = vor.u32 %v2449_v57, %v1892_v59  ;;  %v2582_v4 = vld [vmem:[%s2642_s17 + $0x3d0] sm:$0xff]  ;;  %v2581_v8 = vld [vmem:[%s2642_s17 + $0x3c8] sm:$0xff] }
  0x63   : > { %1568 = vmatpush.bf16.msra.mxu0 %v2526_v10  ;;  %v2564_v10 = vld [vmem:[%s2642_s17 + $0x340] sm:$0xff] }
  0x64   : > { %1587 = vmatpush.bf16.msra.mxu1 %v2534_v11  ;;  %v2556_v11 = vld [vmem:[%s2642_s17 + $0x300] sm:$0xff] }
  0x65   : > { %1606 = vmatpush.bf16.msra.mxu2 %v2542_v6  ;;  %v2565_v6 = vld [vmem:[%s2642_s17 + $0x348] sm:$0xff] }
  0x66   : > { %1625 = vmatpush.bf16.msra.mxu3 %v2550_v12  ;;  %v2580_v12 = vld [vmem:[%s2642_s17 + $0x3c0] sm:$0xff] }
  0x67   : > { %1569 = vmatpush.bf16.msra.mxu0 %v2525_v14  ;;  %v2442_v14 = vld [vmem:[%s2993_s0 + $0x6c] sm:$0xf0] }
  0x68   : > { %1588 = vmatpush.bf16.msra.mxu1 %v2533_v15  ;;  %v2434_v15 = vld [vmem:[%s2993_s0 + $0x34] sm:$0xf] }
  0x69   : > { %1607 = vmatpush.bf16.msra.mxu2 %v2541_v13  ;;  %v1834_v13 = vld [vmem:[%s2993_s0 + $0x30] sm:$0xf] }
  0x6a   : > { %1626 = vmatpush.bf16.msra.mxu3 %v2549_v16  ;;  %v1836_v16 = vld [vmem:[%s2993_s0 + $0x70] sm:$0xf0] }
  0x6b   : > { %1570 = vmatpush.bf16.msra.mxu0 %v2524_v19  ;;  %v2435_v19 = vld [vmem:[%s2993_s0 + $0x3c] sm:$0xf]  ;;  %v1839_v22 = vor.u32 %v2434_v15, %v1836_v16 }
  0x6c   : > { %1589 = vmatpush.bf16.msra.mxu1 %v2532_v20  ;;  %v1844_v20 = vld [vmem:[%s2993_s0 + $0x78] sm:$0xf0] }
  0x6d   : > { %1608 = vmatpush.bf16.msra.mxu2 %v2540_v17  ;;  %v1842_v17 = vld [vmem:[%s2993_s0 + $0x38] sm:$0xf] }
  0x6e   : > { %1627 = vmatpush.bf16.msra.mxu3 %v2548_v21  ;;  %1571 = vmatmul.bf16.vlgmr.msra.gmra.mxu0 %v1819_v34  ;;  %v1835_v21 = vor.u32 %v2442_v14, %v1834_v13 }
  0x6f   : > { %1639 = vmatpush.bf16.msrb.mxu0 %v2563_v24  ;;  %1590 = vmatmul.bf16.vlgmr.msra.gmra.mxu1 %v1823_v36  ;;  %v1847_v24 = vor.u32 %v2435_v19, %v1844_v20  ;;  %v1911_v36 = vor.u32 %v2451_v31, %v1908_v32 }
  0x70   : > { %1658 = vmatpush.bf16.msrb.mxu1 %v2571_v25  ;;  %1609 = vmatmul.bf16.vlgmr.msra.gmra.mxu2 %v1827_v37  ;;  %v1898_v25 = vld [vmem:[%s2993_s0 + $0xb0] sm:$0xf] }
  0x71   : > { %1677 = vmatpush.bf16.msrb.mxu2 %v2579_v18  ;;  %1628 = vmatmul.bf16.vlgmr.msra.gmra.mxu3 %v1831_v38  ;;  %v2443_v18 = vld [vmem:[%s2993_s0 + $0x74] sm:$0xf0]  ;;  %v1899_v33 = vor.u32 %v2458_v26, %v1898_v25 }
  0x72   : > { %1696 = vmatpush.bf16.msrb.mxu3 %v2587_v27  ;;  %v1843_v23 = vor.u32 %v2443_v18, %v1842_v17  ;;  %v2450_v27 = vld [vmem:[%s2993_s0 + $0xb4] sm:$0xf] }
  0x73   : > { %1640 = vmatpush.bf16.msrb.mxu0 %v2562_v39 }
  0x74   : > { %1659 = vmatpush.bf16.msrb.mxu1 %v2570_v35  ;;  %v1907_v35 = vor.u32 %v2459_v30, %v1906_v29 }
  0x75   : > { %1678 = vmatpush.bf16.msrb.mxu2 %v2578_v28  ;;  %v1900_v28 = vld [vmem:[%s2993_s0 + $0xf0] sm:$0xf0] }
  0x76   : > { %1697 = vmatpush.bf16.msrb.mxu3 %v2586_v40  ;;  %v1903_v34 = vor.u32 %v2450_v27, %v1900_v28 }
  0x77   : > { %1641 = vmatpush.bf16.msrb.mxu0 %v2561_v43 }
  0x78   : > { %1660 = vmatpush.bf16.msrb.mxu1 %v2569_v42 }
  0x79   : > { %1679 = vmatpush.bf16.msrb.mxu2 %v2577_v41 }
  0x7a   : > { %1698 = vmatpush.bf16.msrb.mxu3 %v2585_v44 }
  0x7b   : > { %1642 = vmatpush.bf16.msrb.mxu0 %v2560_v47 }
  0x7c   : > { %1661 = vmatpush.bf16.msrb.mxu1 %v2568_v46 }
  0x7d   : > { %1680 = vmatpush.bf16.msrb.mxu2 %v2576_v45 }
  0x7e   : > { %1699 = vmatpush.bf16.msrb.mxu3 %v2584_v48  ;;  %1576 = vmatmul.bf16.gmra.mxu0 %v1883_v62 }
  0x7f   : > { %1643 = vmatpush.bf16.msrb.mxu0 %v2559_v58  ;;  %1595 = vmatmul.bf16.gmra.mxu1 %v1887_v0  ;;  %v466_v37 = vpop.permute.xlu0 %465  ;;  %v476_v51 = vpop.permute.xlu1 %475 }
  0x80   : > { %1662 = vmatpush.bf16.msrb.mxu1 %v2567_v52  ;;  %1614 = vmatmul.bf16.gmra.mxu2 %v1891_v1 }
  0x81   : > { %1681 = vmatpush.bf16.msrb.mxu2 %v2575_v49  ;;  %1633 = vmatmul.bf16.gmra.mxu3 %v1895_v2 }
  0x82   : > { %1700 = vmatpush.bf16.msrb.mxu3 %v2583_v60 }
  0x83   : > { %1644 = vmatpush.bf16.msrb.mxu0 %v2558_v3 }
  0x84   : > { %1663 = vmatpush.bf16.msrb.mxu1 %v2566_v63 }
  0x85   : > { %1682 = vmatpush.bf16.msrb.mxu2 %v2574_v61 }
  0x86   : > { %1701 = vmatpush.bf16.msrb.mxu3 %v2582_v4 }
  0x87   : > { %1645 = vmatpush.bf16.msrb.mxu0 %v2557_v7  ;;  %v471_v42 = vpop.permute.xlu0 %470 }
  0x88   : > { %1664 = vmatpush.bf16.msrb.mxu1 %v2565_v6  ;;  %v481_v60 = vpop.permute.xlu1 %480 }
  0x89   : > { %1683 = vmatpush.bf16.msrb.mxu2 %v2573_v5 }
  0x8a   : > { %1702 = vmatpush.bf16.msrb.mxu3 %v2581_v8 }
  0x8b   : > { %1646 = vmatpush.bf16.msrb.mxu0 %v2556_v11 }
  0x8c   : > { %1665 = vmatpush.bf16.msrb.mxu1 %v2564_v10 }
  0x8d   : > { %1684 = vmatpush.bf16.msrb.mxu2 %v2572_v9 }
  0x8e   : > { %1703 = vmatpush.bf16.msrb.mxu3 %v2580_v12  ;;  %1647 = vmatmul.bf16.vlgmr.msrb.gmra.mxu0 %v1835_v21 }
  0x8f   : > { %1666 = vmatmul.bf16.vlgmr.msrb.gmra.mxu1 %v1839_v22 }
  0x90   : > { %1685 = vmatmul.bf16.vlgmr.msrb.gmra.mxu2 %v1843_v23 }
  0x91   : > { %1704 = vmatmul.bf16.vlgmr.msrb.gmra.mxu3 %v1847_v24 }
  0x9e   : > { %1652 = vmatmul.bf16.gmra.mxu0 %v1899_v33 }
  0x9f   : > { %1671 = vmatmul.bf16.gmra.mxu1 %v1903_v34 }
  0xa0   : > { %1690 = vmatmul.bf16.gmra.mxu2 %v1907_v35 }
  0xa1   : > { %1709 = vmatmul.bf16.gmra.mxu3 %v1911_v36 }
  0xab   : > { %v1420_v38 = vpop.f32.mrf.mxu0 }
  0xac   : > { %v1439_v39 = vpop.f32.mrf.mxu1  ;;  %v1421_v40 = vadd.f32 %v1420_v38, %v466_v37 }
  0xae   : > { %v1440_v41 = vadd.f32 %v1439_v39, %v1421_v40 }
  0xb3   : > { %v1458_v43 = vpop.f32.mrf.mxu2  ;;  %v1422_v46 = vpop.f32.mrf.mxu0 }
  0xb4   : > { %v1477_v44 = vpop.f32.mrf.mxu3  ;;  %v1459_v45 = vadd.f32 %v1458_v43, %v1440_v41  ;;  %v1441_v47 = vpop.f32.mrf.mxu1  ;;  %v1423_v48 = vadd.f32 %v1422_v46, %v471_v42 }
  0xb6   : > { %v1478_v49 = vadd.f32 %v1477_v44, %v1459_v45  ;;  %v1442_v50 = vadd.f32 %v1441_v47, %v1423_v48 }
  0xbb   : > { %v1460_v52 = vpop.f32.mrf.mxu2  ;;  %v1425_v55 = vpop.f32.mrf.mxu0 }
  0xbc   : > { %v1479_v53 = vpop.f32.mrf.mxu3  ;;  %v1461_v54 = vadd.f32 %v1460_v52, %v1442_v50  ;;  %v1444_v56 = vpop.f32.mrf.mxu1  ;;  %v1426_v57 = vadd.f32 %v1425_v55, %v476_v51 }
  0xbe   : > { %v1480_v58 = vadd.f32 %v1479_v53, %v1461_v54  ;;  %v1445_v59 = vadd.f32 %v1444_v56, %v1426_v57 }
  0xc3   : > { %v1463_v61 = vpop.f32.mrf.mxu2  ;;  %v1427_v0 = vpop.f32.mrf.mxu0 }
  0xc4   : > { %v1482_v62 = vpop.f32.mrf.mxu3  ;;  %v1464_v63 = vadd.f32 %v1463_v61, %v1445_v59  ;;  %v1446_v1 = vpop.f32.mrf.mxu1  ;;  %v1428_v2 = vadd.f32 %v1427_v0, %v481_v60 }
  0xc6   : > { %v1483_v3 = vadd.f32 %v1482_v62, %v1464_v63  ;;  %v1447_v4 = vadd.f32 %v1446_v1, %v1428_v2 }
  0xcb   : > { %v1465_v5 = vpop.f32.mrf.mxu2  ;;  %v1496_v8 = vpop.f32.mrf.mxu0 }
  0xcc   : > { %v1484_v6 = vpop.f32.mrf.mxu3  ;;  %v1466_v7 = vadd.f32 %v1465_v5, %v1447_v4  ;;  %v1515_v9 = vpop.f32.mrf.mxu1  ;;  %v1497_v31 = vadd.f32 %v1496_v8, %v1478_v49 }
  0xce   : > { %v1485_v10 = vadd.f32 %v1484_v6, %v1466_v7  ;;  %v1516_v32 = vadd.f32 %v1515_v9, %v1497_v31 }
  0xd3   : > { %v1534_v11 = vpop.f32.mrf.mxu2  ;;  %v1498_v13 = vpop.f32.mrf.mxu0 }
  0xd4   : > { %v1553_v12 = vpop.f32.mrf.mxu3  ;;  %v1517_v14 = vpop.f32.mrf.mxu1  ;;  %v1535_v34 = vadd.f32 %v1534_v11, %v1516_v32  ;;  %v1499_v38 = vadd.f32 %v1498_v13, %v1480_v58 }
  0xd6   : > { %v1554_v39 = vadd.f32 %v1553_v12, %v1535_v34  ;;  %v1518_v40 = vadd.f32 %v1517_v14, %v1499_v38 }
  0xdb   : > { %v1536_v15 = vpop.f32.mrf.mxu2  ;;  %v1501_v17 = vpop.f32.mrf.mxu0 }
  0xdc   : > { %v1555_v16 = vpop.f32.mrf.mxu3  ;;  %v1520_v18 = vpop.f32.mrf.mxu1  ;;  %v1537_v43 = vadd.f32 %v1536_v15, %v1518_v40  ;;  %v1502_v47 = vadd.f32 %v1501_v17, %v1483_v3 }
  0xde   : > { %v1556_v50 = vadd.f32 %v1555_v16, %v1537_v43  ;;  %v1521_v49 = vadd.f32 %v1520_v18, %v1502_v47 }
  0xe3   : > { %v1539_v19 = vpop.f32.mrf.mxu2  ;;  %v1503_v21 = vpop.f32.mrf.mxu0 }
  0xe4   : > { %v1558_v20 = vpop.f32.mrf.mxu3  ;;  %v1522_v22 = vpop.f32.mrf.mxu1  ;;  %v1540_v54 = vadd.f32 %v1539_v19, %v1521_v49  ;;  %v1504_v59 = vadd.f32 %v1503_v21, %v1485_v10 }
  0xe6   : > { %v1559_v62 = vadd.f32 %v1558_v20, %v1540_v54  ;;  %v1523_v0 = vadd.f32 %v1522_v22, %v1504_v59 }
  0xeb   : > { %v1541_v23 = vpop.f32.mrf.mxu2  ;;  %v1572_v25 = vpop.f32.mrf.mxu0 }
  0xec   : > { %v1560_v24 = vpop.f32.mrf.mxu3  ;;  %v1591_v26 = vpop.f32.mrf.mxu1  ;;  %v1573_v41 = vadd.f32 %v1572_v25, %v1554_v39  ;;  %v1542_v4 = vadd.f32 %v1541_v23, %v1523_v0 }
  0xee   : > { %v1592_v48 = vadd.f32 %v1591_v26, %v1573_v41  ;;  %v1561_v13 = vadd.f32 %v1560_v24, %v1542_v4 }
  0xf3   : > { %v1610_v27 = vpop.f32.mrf.mxu2  ;;  %v1574_v29 = vpop.f32.mrf.mxu0 }
  0xf4   : > { %v1629_v28 = vpop.f32.mrf.mxu3  ;;  %v1593_v30 = vpop.f32.mrf.mxu1  ;;  %v1611_v51 = vadd.f32 %v1610_v27, %v1592_v48  ;;  %v1575_v52 = vadd.f32 %v1574_v29, %v1556_v50 }
  0xf6   : > { %v1630_v55 = vadd.f32 %v1629_v28, %v1611_v51  ;;  %v1594_v60 = vadd.f32 %v1593_v30, %v1575_v52 }
  0xfb   : > { %v1612_v33 = vpop.f32.mrf.mxu2  ;;  %v1577_v36 = vpop.f32.mrf.mxu0 }
  0xfc   : > { %v1631_v35 = vpop.f32.mrf.mxu3  ;;  %v1596_v37 = vpop.f32.mrf.mxu1  ;;  %v1613_v63 = vadd.f32 %v1612_v33, %v1594_v60  ;;  %v1578_v1 = vadd.f32 %v1577_v36, %v1559_v62 }
  0xfe   : > { %v1632_v5 = vadd.f32 %v1631_v35, %v1613_v63  ;;  %v1597_v10 = vadd.f32 %v1596_v37, %v1578_v1 }
 0x103   : > { %v1615_v42 = vpop.f32.mrf.mxu2  ;;  %v1579_v45 = vpop.f32.mrf.mxu0 }
 0x104   : > { %v1634_v44 = vpop.f32.mrf.mxu3  ;;  %v1598_v46 = vpop.f32.mrf.mxu1  ;;  %v1616_v14 = vadd.f32 %v1615_v42, %v1597_v10  ;;  %v1580_v15 = vadd.f32 %v1579_v45, %v1561_v13 }
 0x106   : > { %v1635_v18 = vadd.f32 %v1634_v44, %v1616_v14  ;;  %v1599_v22 = vadd.f32 %v1598_v46, %v1580_v15 }
 0x10b   : > { %v1617_v53 = vpop.f32.mrf.mxu2  ;;  %v1648_v57 = vpop.f32.mrf.mxu0 }
 0x10c   : > { %v1636_v56 = vpop.f32.mrf.mxu3  ;;  %v1667_v58 = vpop.f32.mrf.mxu1  ;;  %v1649_v61 = vadd.f32 %v1648_v57, %v1630_v55  ;;  %v1618_v27 = vadd.f32 %v1617_v53, %v1599_v22 }
 0x10e   : > { %v1668_v2 = vadd.f32 %v1667_v58, %v1649_v61  ;;  %v1637_v29 = vadd.f32 %v1636_v56, %v1618_v27 }
 0x113   : > { %v1686_v3 = vpop.f32.mrf.mxu2  ;;  %v1650_v8 = vpop.f32.mrf.mxu0 }
 0x114   : > { %v1687_v6 = vadd.f32 %v1686_v3, %v1668_v2  ;;  %v1705_v7 = vpop.f32.mrf.mxu3  ;;  %v1669_v9 = vpop.f32.mrf.mxu1  ;;  %v1651_v12 = vadd.f32 %v1650_v8, %v1632_v5 }
 0x116   : > { %v1706_v11 = vadd.f32 %v1705_v7, %v1687_v6  ;;  %v1670_v16 = vadd.f32 %v1669_v9, %v1651_v12 }
 0x118   : > { %1716 = vst.msk [vmem:[%s2980_s8] sm:$0xff] %vm1715_vm0, %v1706_v11 }
 0x11b   : > { %v1688_v17 = vpop.f32.mrf.mxu2  ;;  %v1653_v21 = vpop.f32.mrf.mxu0 }
 0x11c   : > { %v1689_v19 = vadd.f32 %v1688_v17, %v1670_v16  ;;  %v1707_v20 = vpop.f32.mrf.mxu3  ;;  %v1654_v25 = vadd.f32 %v1653_v21, %v1635_v18  ;;  %v1672_v26 = vpop.f32.mrf.mxu1 }
 0x11e   : > { %v1708_v23 = vadd.f32 %v1707_v20, %v1689_v19  ;;  %v1673_v24 = vadd.f32 %v1672_v26, %v1654_v25 }
 0x120   : > { %1717 = vst.msk [vmem:[%s2980_s8 + $0x8] sm:$0xff] %vm1715_vm0, %v1708_v23 }
 0x123   : > { %v1691_v28 = vpop.f32.mrf.mxu2  ;;  %v1655_v32 = vpop.f32.mrf.mxu0 }
 0x124   : > { %v1692_v30 = vadd.f32 %v1691_v28, %v1673_v24  ;;  %v1710_v31 = vpop.f32.mrf.mxu3  ;;  %v1656_v34 = vadd.f32 %v1655_v32, %v1637_v29  ;;  %v1674_v35 = vpop.f32.mrf.mxu1 }
 0x126   : > { %v1711_v33 = vadd.f32 %v1710_v31, %v1692_v30  ;;  %v1675_v36 = vadd.f32 %v1674_v35, %v1656_v34 }
 0x128   : > { %1718 = vst.msk [vmem:[%s2980_s8 + $0x10] sm:$0xff] %vm1715_vm0, %v1711_v33 }
 0x12b   : > { %v1693_v37 = vpop.f32.mrf.mxu2 }
 0x12c   : > { %v1694_v38 = vadd.f32 %v1693_v37, %v1675_v36  ;;  %v1712_v39 = vpop.f32.mrf.mxu3 }
 0x12e   : > { %v1713_v40 = vadd.f32 %v1712_v39, %v1694_v38 }
 0x130   : > { %1719 = vst.msk [vmem:[%s2980_s8 + $0x18] sm:$0xff] %vm1715_vm0, %v1713_v40 }
 0x131 PF: > { %s13_s12 = sadd.s32 1, %s2605_s12  }
 0x132   : > { %p10_p4 = scmp.ge.s32.totalorder %s13_s12, 4  }
 0x134   :  { %12 = sbr.rel (!%p10_p4) target bundleno = 1 (0x1), region = 62 }

</bundles_post_ra>
